<compile_context>
chip_gen: v7x
topology: tpu7x:2x2x1
jax: 0.10.0
libtpu: 0.0.40
codegen_flags: <defaults>
</compile_context>

<pallas_src>
from typing import NamedTuple

import jax
import jax.numpy as jnp
from jax.experimental import pallas as pl
from jax.experimental.pallas import tpu as pltpu


# ----------------------------------------------------------------------------
# Helpers: padding / VMEM budget / tile selection
# ----------------------------------------------------------------------------

def _round_up(x, m):
    return ((x + m - 1) // m) * m


def _vmem_budget_bytes():
    """Generation-aware usable-VMEM budget (leaves headroom below physical)."""
    cap = 64 << 20  # conservative default: v7x per-TensorCore capacity
    try:
        info = pltpu.get_tpu_info()
        cap = int(getattr(info, "vmem_capacity_bytes", cap))
    except Exception:
        pass
    # ~54 MiB on a 64 MiB part, ~109 MiB on a 128 MiB part.
    return int(min(cap - (8 << 20), int(cap * 0.85)))


_TM_CANDIDATES = (512, 384, 256, 128, 64, 32, 16, 8)     # sublane multiples of 8
_TN_CANDIDATES = (2048, 1024, 512, 256, 128)             # lane multiples of 128


def _vmem_estimate(tm, tn, kp, hp):
    """Exact VMEM accounting: 2x (double-buffer) per streamed operand, once for
    the scratch.  No extra 2x on top (previous version double-counted)."""
    return (2 * tm * kp * 2          # x tile, bf16
            + 2 * kp * hp * 2        # W1 (resident), bf16
            + 2 * 8 * hp * 4         # b1 (sublane-padded), f32
            + 2 * hp * tn * 2        # W2 vocab tile, bf16
            + 2 * 8 * tn * 4         # b2 vocab tile, f32
            + 2 * tm * tn * 4        # output tile, f32
            + tm * hp * 2)           # hidden scratch, bf16


def _select_tn(kp, hp, vocab, budget):
    """Pick the widest lane-dense vocab tile that fits assuming the largest TM,
    so the per-call TM choice can never be starved by TN."""
    vcap = _round_up(vocab, 128)
    tm_assume = _TM_CANDIDATES[0]
    for tn in _TN_CANDIDATES:
        tn = min(tn, vcap)
        if _vmem_estimate(tm_assume, tn, kp, hp) <= budget:
            return tn
    return min(128, vcap)


def _select_tm(batch, kp, hp, vocab_padded, tn, budget):
    """Pick TM minimizing real HBM traffic: W2 is re-read ceil(B/TM) times and
    padded batch rows cost extra x reads / logit writes."""
    b8 = _round_up(batch, 8)
    w2_bytes = hp * vocab_padded * 2
    best = None
    for tm in _TM_CANDIDATES:
        tm = min(tm, b8)
        if _vmem_estimate(tm, tn, kp, hp) > budget:
            continue
        bp = _round_up(batch, tm)
        traffic = (bp // tm) * w2_bytes + bp * (kp * 2 + vocab_padded * 4)
        if best is None or traffic < best[0]:
            best = (traffic, tm)
    if best is None:
        # TODO(synk): W1 cannot stay resident in VMEM (huge in_feat*hidden on a
        # 64 MiB part) -> tile the first matmul over K or split into two
        # pallas_calls.  Not needed for the shapes exercised here.
        raise NotImplementedError(
            "NPLM kernel: resident W1 exceeds the VMEM budget; K-tiled "
            "fallback not implemented.")
    return best[1]


# ----------------------------------------------------------------------------
# Kernel
# ----------------------------------------------------------------------------

def nplm_mlp_kernel(x_ref, w1_ref, b1_ref, w2_ref, b2_ref, o_ref, h_ref):
    # x_ref:  (TM, KP)  bf16  resident across the vocab-tile axis
    # w1_ref: (KP, HP)  bf16  resident (full)
    # b1_ref: (1, HP)   f32   resident
    # w2_ref: (HP, TN)  bf16  vocab tile
    # b2_ref: (1, TN)   f32   vocab tile
    # o_ref:  (TM, TN)  out dtype (f32 by default)
    # h_ref:  (TM, HP)  bf16  scratch: hidden activation, reused across vocab
    #                         tiles of the same batch tile.
    #
    # NOTE: h_ref reuse is only correct because the vocab axis (grid axis 1) is
    # the innermost axis and is marked "arbitrary".  Never mark it "parallel".
    @pl.when(pl.program_id(1) == 0)
    def _():
        h = jnp.dot(x_ref[...], w1_ref[...], preferred_element_type=jnp.float32)
        h = jnp.maximum(h + b1_ref[...], 0.0)          # bias + ReLU
        h_ref[...] = h.astype(h_ref.dtype)             # store once, as bf16

    out = jnp.dot(h_ref[...], w2_ref[...], preferred_element_type=jnp.float32)
    o_ref[...] = (out + b2_ref[...]).astype(o_ref.dtype)


# ----------------------------------------------------------------------------
# Parameter preparation (done ONCE, outside the per-call path)
# ----------------------------------------------------------------------------

class NPLMParams(NamedTuple):
    embed_table: jnp.ndarray   # (vocab, embed) f32
    w1_p: jnp.ndarray          # (KP, HP) bf16, zero-padded
    b1_p: jnp.ndarray          # (1, HP)  f32, zero-padded
    w2_p: jnp.ndarray          # (HP, VP) bf16, zero-padded
    b2_p: jnp.ndarray          # (1, VP)  f32, zero-padded
    in_feat: int
    hidden: int
    vocab: int
    kp: int
    hp: int
    vp: int
    tn: int
    vmem_budget: int


def prepare_params(embed_table, w1, b1, w2, b2):
    """Pad + cast the weights once and cache the result; call this outside the
    training/inference loop so each forward only prepares x."""
    in_feat, hidden = w1.shape
    vocab = w2.shape[1]

    kp = _round_up(in_feat, 128)
    hp = _round_up(hidden, 128)

    budget = _vmem_budget_bytes()
    tn = _select_tn(kp, hp, vocab, budget)
    vp = _round_up(vocab, tn)

    w1_p = jnp.zeros((kp, hp), jnp.bfloat16).at[:in_feat, :hidden].set(
        w1.astype(jnp.bfloat16))
    b1_p = jnp.zeros((1, hp), jnp.float32).at[:, :hidden].set(b1.reshape(1, -1))
    w2_p = jnp.zeros((hp, vp), jnp.bfloat16).at[:hidden, :vocab].set(
        w2.astype(jnp.bfloat16))
    b2_p = jnp.zeros((1, vp), jnp.float32).at[:, :vocab].set(b2.reshape(1, -1))

    return NPLMParams(embed_table, w1_p, b1_p, w2_p, b2_p,
                      in_feat, hidden, vocab, kp, hp, vp, tn, budget)


# ----------------------------------------------------------------------------
# Forward
# ----------------------------------------------------------------------------

def nplm_forward(tokens, params: NPLMParams, logits_dtype=jnp.float32):
    """tokens: int32 [B, block_size-1] -> logits [B, vocab] (f32 by default)."""
    B, ctx = tokens.shape
    kp, hp, vp, tn = params.kp, params.hp, params.vp, params.tn
    in_feat, vocab = params.in_feat, params.vocab

    # Per-call activation prep only (weights are already padded/cast).
    # TODO(synk): fuse this gather into the kernel with scalar-prefetched ids.
    x = jnp.take(params.embed_table, tokens, axis=0).reshape(B, in_feat)
    x = x.astype(jnp.bfloat16)

    tm = _select_tm(B, kp, hp, vp, tn, params.vmem_budget)
    bp = _round_up(B, tm)
    x_p = jnp.pad(x, ((0, bp - B), (0, kp - in_feat)))

    grid = (bp // tm, vp // tn)
    n_batch_tiles = grid[0]

    out_bytes = jnp.dtype(logits_dtype).itemsize
    flops = 2 * bp * kp * hp + 2 * bp * hp * vp
    # Real traffic: x + resident W1/b1 once, W2/b2 re-streamed per batch tile,
    # logits written once.
    bytes_accessed = (bp * kp * 2
                      + kp * hp * 2 + hp * 4
                      + n_batch_tiles * (hp * vp * 2 + vp * 4)
                      + bp * vp * out_bytes)

    est = _vmem_estimate(tm, tn, kp, hp)
    vmem_limit = int(min(max(est + (4 << 20), 32 << 20), params.vmem_budget))

    out = pl.pallas_call(
        nplm_mlp_kernel,
        out_shape=jax.ShapeDtypeStruct((bp, vp), logits_dtype),
        grid_spec=pltpu.PrefetchScalarGridSpec(
            num_scalar_prefetch=0,
            grid=grid,
            in_specs=[
                pl.BlockSpec((tm, kp), lambda i, j: (i, 0)),   # x  (resident over j)
                pl.BlockSpec((kp, hp), lambda i, j: (0, 0)),   # W1 (resident)
                pl.BlockSpec((1, hp),  lambda i, j: (0, 0)),   # b1 (resident)
                pl.BlockSpec((hp, tn), lambda i, j: (0, j)),   # W2 vocab tile
                pl.BlockSpec((1, tn),  lambda i, j: (0, j)),   # b2 vocab tile
            ],
            out_specs=pl.BlockSpec((tm, tn), lambda i, j: (i, j)),
            scratch_shapes=[pltpu.VMEM((tm, hp), jnp.bfloat16)],  # bf16 hidden
        ),
        compiler_params=pltpu.CompilerParams(
            # Vocab axis MUST stay "arbitrary" (h scratch reuse across j).
            dimension_semantics=("parallel", "arbitrary"),
            vmem_limit_bytes=vmem_limit,
        ),
        cost_estimate=pl.CostEstimate(
            flops=flops, transcendentals=0, bytes_accessed=bytes_accessed),
    )(x_p, params.w1_p, params.b1_p, params.w2_p, params.b2_p)

    return out[:B, :vocab]


# ----------------------------------------------------------------------------
# Init mirroring PyTorch defaults
# ----------------------------------------------------------------------------

def init_params(key, vocab_size, embed_size, hidden_size, block_size):
    """N(0,1) embedding; U(+-1/sqrt(fan_in)) Linear weights & biases.
    Linear weights stored as (in, out)."""
    in_feat = (block_size - 1) * embed_size
    k_e, k_w1, k_b1, k_w2, k_b2 = jax.random.split(key, 5)

    embed_table = jax.random.normal(k_e, (vocab_size, embed_size), jnp.float32)

    bound1 = 1.0 / (in_feat ** 0.5)
    w1 = jax.random.uniform(k_w1, (in_feat, hidden_size), jnp.float32,
                            minval=-bound1, maxval=bound1)
    b1 = jax.random.uniform(k_b1, (hidden_size,), jnp.float32,
                            minval=-bound1, maxval=bound1)

    bound2 = 1.0 / (hidden_size ** 0.5)
    w2 = jax.random.uniform(k_w2, (hidden_size, vocab_size), jnp.float32,
                            minval=-bound2, maxval=bound2)
    b2 = jax.random.uniform(k_b2, (vocab_size,), jnp.float32,
                            minval=-bound2, maxval=bound2)
    return embed_table, w1, b1, w2, b2


if __name__ == "__main__":
    # Small shapes consistent with the module's forward.
    vocab_size = 32
    embed_size = 8
    hidden_size = 32
    block_size = 5          # context length = block_size - 1 = 4
    batch = 8

    key = jax.random.PRNGKey(0)
    k_params, k_tokens = jax.random.split(key)
    embed_table, w1, b1, w2, b2 = init_params(
        k_params, vocab_size, embed_size, hidden_size, block_size)

    tokens = jax.random.randint(
        k_tokens, (batch, block_size - 1), 0, vocab_size, dtype=jnp.int32)

    # Weights prepared ONCE (padding + bf16 casts hoisted out of the call path).
    params = prepare_params(embed_table, w1, b1, w2, b2)

    logits = nplm_forward(tokens, params)
    jax.block_until_ready(logits)
    assert logits.shape == (batch, vocab_size)
    assert logits.dtype == jnp.float32

    # Run a second forward (exercises the cached-weights path).
    logits2 = nplm_forward(tokens, params)
    jax.block_until_ready(logits2)
    assert jnp.allclose(logits, logits2)

    # Pure-JAX reference using the same bf16-operand / f32-accumulate recipe.
    x_ref = jnp.take(embed_table, tokens, axis=0).reshape(batch, -1)
    h_ref = jnp.dot(x_ref.astype(jnp.bfloat16), w1.astype(jnp.bfloat16),
                    preferred_element_type=jnp.float32) + b1
    h_ref = jnp.maximum(h_ref, 0.0).astype(jnp.bfloat16)
    ref = jnp.dot(h_ref, w2.astype(jnp.bfloat16),
                  preferred_element_type=jnp.float32) + b2
    assert jnp.allclose(logits, ref, atol=1e-2, rtol=1e-2)

    # Loose sanity check against the full-f32 (PyTorch-equivalent) reference.
    ref_f32 = jnp.maximum(x_ref @ w1 + b1, 0.0) @ w2 + b2
    assert jnp.allclose(logits, ref_f32, atol=5e-2, rtol=5e-2)

    print("KERNEL_OK")
</pallas_src>

<mosaic_0001>
module attributes {stable_mosaic.version = 11 : i64} {
  func.func @nplm_mlp_kernel(%arg0: i32, %arg1: i32, %arg2: memref<8x128xbf16, #tpu.memory_space<vmem>>, %arg3: memref<128x128xbf16, #tpu.memory_space<vmem>>, %arg4: memref<1x128xf32, #tpu.memory_space<vmem>>, %arg5: memref<128x128xbf16, #tpu.memory_space<vmem>>, %arg6: memref<1x128xf32, #tpu.memory_space<vmem>>, %arg7: memref<8x128xf32, #tpu.memory_space<vmem>>, %arg8: memref<8x128xbf16, #tpu.memory_space<vmem>>) attributes {dimension_semantics = [#tpu.dimension_semantics<parallel>, #tpu.dimension_semantics<arbitrary>], iteration_bounds = array<i64: 1, 1>, scalar_prefetch = 0 : i64, scratch_operands = 1 : i64, tpu.core_type = #tpu.core_type<tc>, window_params = [{transform_indices = @transform_0, window_bounds = array<i64: 8, 128>}, {pipeline_mode = #tpu.pipeline_mode<synchronous>, transform_indices = @transform_1, window_bounds = array<i64: 128, 128>}, {pipeline_mode = #tpu.pipeline_mode<synchronous>, transform_indices = @transform_2, window_bounds = array<i64: 1, 128>}, {transform_indices = @transform_3, window_bounds = array<i64: 128, 128>}, {transform_indices = @transform_4, window_bounds = array<i64: 1, 128>}, {transform_indices = @transform_5, window_bounds = array<i64: 8, 128>}]} {
    %c0_i32 = arith.constant 0 : i32
    %0 = arith.cmpi eq, %arg1, %c0_i32 : i32
    %1 = arith.extui %0 : i1 to i32
    %c0_i32_0 = arith.constant 0 : i32
    %2 = arith.cmpi ne, %1, %c0_i32_0 : i32
    scf.if %2 {
      %c0_8 = arith.constant 0 : index
      %c0_9 = arith.constant 0 : index
      %10 = vector.load %arg2[%c0_8, %c0_9] : memref<8x128xbf16, #tpu.memory_space<vmem>>, vector<8x128xbf16>
      %c0_10 = arith.constant 0 : index
      %c0_11 = arith.constant 0 : index
      %11 = vector.load %arg3[%c0_10, %c0_11] : memref<128x128xbf16, #tpu.memory_space<vmem>>, vector<128x128xbf16>
      %cst_12 = arith.constant dense<0.000000e+00> : vector<8x128xf32>
      %12 = tpu.matmul %10, %11, %cst_12 {dimension_numbers = #tpu.dot_dimension_numbers<[1], [0], [0], [1], [0, 0, 1, 1], [], []>} : vector<8x128xbf16>, vector<128x128xbf16>, vector<8x128xf32> -> vector<8x128xf32>
      %c0_13 = arith.constant 0 : index
      %c0_14 = arith.constant 0 : index
      %13 = vector.load %arg4[%c0_13, %c0_14] : memref<1x128xf32, #tpu.memory_space<vmem>>, vector<1x128xf32>
      %14 = vector.broadcast %13 : vector<1x128xf32> to vector<8x128xf32>
      %15 = arith.addf %12, %14 : vector<8x128xf32>
      %cst_15 = arith.constant 0.000000e+00 : f32
      %16 = vector.broadcast %cst_15 : f32 to vector<8x128xf32>
      %17 = arith.maximumf %15, %16 : vector<8x128xf32>
      %18 = arith.truncf %17 : vector<8x128xf32> to vector<8x128xbf16>
      %c0_16 = arith.constant 0 : index
      %c0_17 = arith.constant 0 : index
      %19 = vector.load %arg8[%c0_16, %c0_17] : memref<8x128xbf16, #tpu.memory_space<vmem>>, vector<8x128xbf16>
      tpu.vector_store %arg8[%c0_16, %c0_17], %18 {strides = array<i32>} : memref<8x128xbf16, #tpu.memory_space<vmem>>, vector<8x128xbf16>,
    } else {
    }
    %c0 = arith.constant 0 : index
    %c0_1 = arith.constant 0 : index
    %3 = vector.load %arg8[%c0, %c0_1] : memref<8x128xbf16, #tpu.memory_space<vmem>>, vector<8x128xbf16>
    %c0_2 = arith.constant 0 : index
    %c0_3 = arith.constant 0 : index
    %4 = vector.load %arg5[%c0_2, %c0_3] : memref<128x128xbf16, #tpu.memory_space<vmem>>, vector<128x128xbf16>
    %cst = arith.constant dense<0.000000e+00> : vector<8x128xf32>
    %5 = tpu.matmul %3, %4, %cst {dimension_numbers = #tpu.dot_dimension_numbers<[1], [0], [0], [1], [0, 0, 1, 1], [], []>} : vector<8x128xbf16>, vector<128x128xbf16>, vector<8x128xf32> -> vector<8x128xf32>
    %c0_4 = arith.constant 0 : index
    %c0_5 = arith.constant 0 : index
    %6 = vector.load %arg6[%c0_4, %c0_5] : memref<1x128xf32, #tpu.memory_space<vmem>>, vector<1x128xf32>
    %7 = vector.broadcast %6 : vector<1x128xf32> to vector<8x128xf32>
    %8 = arith.addf %5, %7 : vector<8x128xf32>
    %c0_6 = arith.constant 0 : index
    %c0_7 = arith.constant 0 : index
    %9 = vector.load %arg7[%c0_6, %c0_7] : memref<8x128xf32, #tpu.memory_space<vmem>>, vector<8x128xf32>
    tpu.vector_store %arg7[%c0_6, %c0_7], %8 {strides = array<i32>} : memref<8x128xf32, #tpu.memory_space<vmem>>, vector<8x128xf32>,
    return
  }
  func.func @transform_0(%arg0: i32, %arg1: i32) -> (i32, i32) {
    %c0_i32 = arith.constant 0 : i32
    %c0_i32_0 = arith.constant 0 : i32
    return %arg0, %c0_i32 : i32, i32
  }
  func.func @transform_1(%arg0: i32, %arg1: i32) -> (i32, i32) {
    %c0_i32 = arith.constant 0 : i32
    %c0_i32_0 = arith.constant 0 : i32
    %c0_i32_1 = arith.constant 0 : i32
    return %c0_i32, %c0_i32_0 : i32, i32
  }
  func.func @transform_2(%arg0: i32, %arg1: i32) -> (i32, i32) {
    %c0_i32 = arith.constant 0 : i32
    %c0_i32_0 = arith.constant 0 : i32
    %c0_i32_1 = arith.constant 0 : i32
    return %c0_i32, %c0_i32_0 : i32, i32
  }
  func.func @transform_3(%arg0: i32, %arg1: i32) -> (i32, i32) {
    %c0_i32 = arith.constant 0 : i32
    %c0_i32_0 = arith.constant 0 : i32
    return %c0_i32, %arg1 : i32, i32
  }
  func.func @transform_4(%arg0: i32, %arg1: i32) -> (i32, i32) {
    %c0_i32 = arith.constant 0 : i32
    %c0_i32_0 = arith.constant 0 : i32
    return %c0_i32, %arg1 : i32, i32
  }
  func.func @transform_5(%arg0: i32, %arg1: i32) -> (i32, i32) {
    %c0_i32 = arith.constant 0 : i32
    return %arg0, %arg1 : i32, i32
  }
}

</mosaic_0001>

<bundles_post_ra>
// kernel: tpu_custom_call.1
= control target key start
LH: loop header
LB: loop body
LE: loop exit
PB: predicated region body
PF: predicated region fallthrough
CT: control target
= control target key end

     0   :  { %10 = vsyncpa [#allocation4], 0  ;;  %s601_s0 = inlined_call_operand.hbm [shape: bf16[8,128], index: 0, kind: input, shape index: {}]   ;;  %s602_s1 = inlined_call_operand.hbm [shape: bf16[128,128], index: 1, kind: input, shape index: {}]   ;;  %s603_s2 = inlined_call_operand.vmem [shape: f32[1,128], index: 2, kind: input, shape index: {}]   ;;  %s604_s3 = inlined_call_operand.hbm [shape: bf16[128,128], index: 3, kind: input, shape index: {}]   ;;  %s605_s4 = inlined_call_operand.vmem [shape: f32[1,128], index: 4, kind: input, shape index: {}]   ;;  %s606_s5 = inlined_call_operand.hbm [shape: f32[8,128], index: 5, kind: output, shape index: {}]  }
   0x1   :  { %11 = vsyncpa [#allocation7], 0 }
   0x2   :  { %12 = vsyncpa [#allocation5], 0  ;;  %s503_s18 = smov [#allocation6]   ;;  %s409_s22 = scalar_lea.hbm %s602_s1, 1024 }
   0x3   :  { %s28_s19 = sshll.u32 %s503_s18, 4  ;;  %p410_p0 = scmp.ne.s32.totalorder %s602_s1, %s409_s22  ;;  %s29_s19 = int_to_ptr.vmem [resolvable:$true] %s28_s19 }
   0x4   :  { %p413_p1 = scmp.lt.u32.totalorder %s409_s22, %s602_s1 }
   0x6   :  { %p415_p2 = pnand %p413_p1, %p410_p0 }
   0x8   :  { %418 = shalt.err (!%p415_p2)
}
   0x9   :  { %s419_s27 = scalar_lea.vmem %s29_s19, 1024  ;;  %p424_p4 = scmp.lt.s32.totalorder %s29_s19, %s29_s19 }
   0xa   :  { %p420_p3 = scmp.ne.s32.totalorder %s29_s19, %s419_s27  ;;  %p425_p5 = scmp.lt.s32.totalorder %s419_s27, %s419_s27 }
   0xc   :  { %p426_p6 = por %p425_p5, %p424_p4 }
   0xe   :  { %p427_p7 = pnand %p426_p6, %p420_p3 }
  0x10   :  { %430 = shalt.err (!%p427_p7)
}
  0x11   :  { %s504_s28 = smov 64   ;;  %s505_s29 = smov 4  }
  0x12   :  { %34 = dma.hbm_to_vmem [thread:$0]  %s602_s1, 1024, %s29_s19, [#allocation7], %s504_s28, %s504_s28, %s505_s29  }
  0x13   :  { %s506_s7 = smov [#allocation3]   ;;  %s507_s9 = smov [#allocation8]  }
  0x14   :  { %s19_s8 = sshll.u32 %s506_s7, 4  ;;  %s42_s10 = sshll.u32 %s507_s9, 4  ;;  %s20_s8 = int_to_ptr.vmem [resolvable:$true] %s19_s8  ;;  %s43_s10 = int_to_ptr.vmem [resolvable:$true] %s42_s10 }
  0x15   :  { %s431_s13 = scalar_lea.hbm %s601_s0, 64 }
  0x16   :  { %p432_p8 = scmp.ne.s32.totalorder %s601_s0, %s431_s13  ;;  %p435_p9 = scmp.lt.u32.totalorder %s431_s13, %s601_s0 }
  0x18   :  { %p437_p10 = pnand %p435_p9, %p432_p8 }
  0x1a   :  { %440 = shalt.err (!%p437_p10)
}
  0x1b   :  { %s441_s1 = scalar_lea.vmem %s20_s8, 64  ;;  %p446_p12 = scmp.lt.s32.totalorder %s20_s8, %s20_s8 }
  0x1c   :  { %p442_p11 = scmp.ne.s32.totalorder %s20_s8, %s441_s1  ;;  %p447_p13 = scmp.lt.s32.totalorder %s441_s1, %s441_s1 }
  0x1e   :  { %p448_p0 = por %p447_p13, %p446_p12 }
  0x20   :  { %p449_p1 = pnand %p448_p0, %p442_p11 }
  0x22   :  { %452 = shalt.err (!%p449_p1)
}
  0x23   :  { %22 = dma.hbm_to_vmem [thread:$0]  %s601_s0, 64, %s20_s8, [#allocation4]  }
  0x24   :  { %s453_s22 = scalar_lea.hbm %s604_s3, 1024 }
  0x25   :  { %p454_p2 = scmp.ne.s32.totalorder %s604_s3, %s453_s22  ;;  %p457_p3 = scmp.lt.u32.totalorder %s453_s22, %s604_s3 }
  0x27   :  { %p459_p4 = pnand %p457_p3, %p454_p2 }
  0x29   :  { %462 = shalt.err (!%p459_p4)
}
  0x2a   :  { %s463_s27 = scalar_lea.vmem %s43_s10, 1024  ;;  %p468_p6 = scmp.lt.s32.totalorder %s43_s10, %s43_s10 }
  0x2b   :  { %p464_p5 = scmp.ne.s32.totalorder %s43_s10, %s463_s27  ;;  %p469_p7 = scmp.lt.s32.totalorder %s463_s27, %s463_s27 }
  0x2d   :  { %p470_p8 = por %p469_p7, %p468_p6 }
  0x2f   :  { %p471_p9 = pnand %p470_p8, %p464_p5 }
  0x31   :  { %474 = shalt.err (!%p471_p9)
}
  0x32   :  { %48 = dma.hbm_to_vmem [thread:$0]  %s604_s3, 1024, %s43_s10, [#allocation7], %s504_s28, %s504_s28, %s505_s29  }
  0x33   :  { %497 = dma.done.wait [#allocation4], 64  }
  0x34   :  { %498 = vsyncadd [#allocation4], 4294967232 }
  0x35   :  { %499 = dma.done.wait [#allocation7], 2048  }
  0x36   :  { %500 = vsyncadd [#allocation7], 4294965248  ;;  %v508_v0 = vmov 0.0   ;;  %vm509_vm0 = vmmov 0   ;;  %v393_v1 = vld [vmem:[#allocation6] sm:$0xff]   ;;  %v394_v2 = vld [vmem:[#allocation6 + $0x8] sm:$0xff]  }
  0x37   :  { %345 = vmatprep.subr.bf16.mxu0 %v508_v0  ;;  %361 = vmatprep.mubr.msk.bf16.mxu0 %vm509_vm0, %v508_v0  ;;  %v395_v3 = vld [vmem:[#allocation6 + $0x10] sm:$0xff]   ;;  %v401_v4 = vld [vmem:[#allocation8] sm:$0xff]   ;;  %v396_v5 = vld [vmem:[#allocation6 + $0x18] sm:$0xff]   ;;  %s510_s7 = smov [#allocation9]  }
  0x38   :  { %365 = vmatprep.subr.bf16.mxu1 %v508_v0  ;;  %381 = vmatprep.mubr.msk.bf16.mxu1 %vm509_vm0, %v508_v0  ;;  %v402_v6 = vld [vmem:[#allocation8 + $0x8] sm:$0xff]   ;;  %v397_v7 = vld [vmem:[#allocation6 + $0x20] sm:$0xff]   ;;  %v403_v8 = vld [vmem:[#allocation8 + $0x10] sm:$0xff]   ;;  %s299_s8 = sshll.u32 %s510_s7, 4  ;;  %s300_s8 = int_to_ptr.vmem [resolvable:$true] %s299_s8 }
  0x39   :  { %346 = vmatpush3.bf16.msra.mxu0 %v393_v1  ;;  %366 = vmatpush3.bf16.msra.mxu1 %v401_v4  ;;  %v398_v9 = vld [vmem:[#allocation6 + $0x28] sm:$0xff]   ;;  %v404_v10 = vld [vmem:[#allocation8 + $0x18] sm:$0xff]   ;;  %v399_v11 = vld [vmem:[#allocation6 + $0x30] sm:$0xff]   ;;  %p480_p11 = scmp.lt.s32.totalorder %s300_s8, %s300_s8 }
  0x3a   :  { %347 = vmatprep.subr.bf16.mxu0 %v508_v0  ;;  %367 = vmatprep.subr.bf16.mxu1 %v508_v0  ;;  %v400_v12 = vld [vmem:[#allocation6 + $0x38] sm:$0xff]   ;;  %v405_v14 = vld [vmem:[#allocation8 + $0x20] sm:$0xff]   ;;  %v406_v15 = vld [vmem:[#allocation8 + $0x28] sm:$0xff]  }
  0x3b   :  { %v65_v13 = vld [vmem:[#allocation3] sm:$0xf]  ;;  %v407_v16 = vld [vmem:[#allocation8 + $0x30] sm:$0xff]   ;;  %v309_v18 = vld [vmem:[%s603_s2] ss:$0 sm:$0xff]  ;;  %s475_s2 = scalar_lea.vmem %s300_s8, 128 }
  0x3c   :  { %v408_v17 = vld [vmem:[#allocation8 + $0x38] sm:$0xff]   ;;  %p476_p10 = scmp.ne.s32.totalorder %s300_s8, %s475_s2  ;;  %p481_p12 = scmp.lt.s32.totalorder %s475_s2, %s475_s2 }
  0x3d   :  { %348 = vmatpush3.bf16.msra.mxu0 %v394_v2  ;;  %368 = vmatpush3.bf16.msra.mxu1 %v402_v6  ;;  %v318_v27 = vld [vmem:[%s605_s4] ss:$0 sm:$0xff] }
  0x3e   :  { %349 = vmatprep.subr.bf16.mxu0 %v508_v0  ;;  %369 = vmatprep.subr.bf16.mxu1 %v508_v0  ;;  %p482_p13 = por %p481_p12, %p480_p11 }
  0x40   :  { %p483_p0 = pnand %p482_p13, %p476_p10 }
  0x41   :  { %350 = vmatpush3.bf16.msra.mxu0 %v395_v3  ;;  %370 = vmatpush3.bf16.msra.mxu1 %v403_v8 }
  0x42   :  { %351 = vmatprep.subr.bf16.mxu0 %v508_v0  ;;  %371 = vmatprep.subr.bf16.mxu1 %v508_v0 }
  0x45   :  { %352 = vmatpush3.bf16.msra.mxu0 %v396_v5  ;;  %372 = vmatpush3.bf16.msra.mxu1 %v404_v10 }
  0x46   :  { %353 = vmatprep.subr.bf16.mxu0 %v508_v0  ;;  %373 = vmatprep.subr.bf16.mxu1 %v508_v0 }
  0x49   :  { %354 = vmatpush3.bf16.msra.mxu0 %v397_v7  ;;  %374 = vmatpush3.bf16.msra.mxu1 %v405_v14 }
  0x4a   :  { %355 = vmatprep.subr.bf16.mxu0 %v508_v0  ;;  %375 = vmatprep.subr.bf16.mxu1 %v508_v0 }
  0x4d   :  { %356 = vmatpush3.bf16.msra.mxu0 %v398_v9  ;;  %376 = vmatpush3.bf16.msra.mxu1 %v406_v15 }
  0x4e   :  { %357 = vmatprep.subr.bf16.mxu0 %v508_v0  ;;  %377 = vmatprep.subr.bf16.mxu1 %v508_v0 }
  0x51   :  { %358 = vmatpush3.bf16.msra.mxu0 %v399_v11  ;;  %378 = vmatpush3.bf16.msra.mxu1 %v407_v16 }
  0x52   :  { %359 = vmatprep.subr.bf16.mxu0 %v508_v0  ;;  %379 = vmatprep.subr.bf16.mxu1 %v508_v0 }
  0x55   :  { %360 = vmatpush3.bf16.msra.mxu0 %v400_v12  ;;  %380 = vmatpush3.bf16.msra.mxu1 %v408_v17 }
  0x58   :  { %362 = vmatmul.mubr.bf16.vlgmr.msra.gmra.mrb[0].mxu0 %v65_v13 }
 0x12b   :  { %v171_v19 = vpop.f32.mrb[0].mxu0 }
 0x12c   :  { %v172_v20 = vadd.f32 %v309_v18, %v171_v19  ;;  %v363_v21 = vpop.f32.mrb[1].mxu0 }
 0x12d   :  { %v174_v22 = vpop.f32.mrb[2].mxu0 }
 0x12e   :  { %v177_v23 = vmax.f32 %v172_v20, 0.0  ;;  %v364_v24 = vpop.f32.mrb[3].mxu0 }
 0x130   :  { %v178_v25 = vpack.c.bf16 %v177_v23, %v177_v23 }
 0x132   :  { %179 = vst [vmem:[#allocation2] sm:$0xf] %v178_v25 }
 0x139   :  { %v180_v26 = vld [vmem:[#allocation2] sm:$0xf] }
 0x13a   :  { %382 = vmatmul.mubr.bf16.vlgmr.msra.gmra.mrb[0].mxu1 %v180_v26 }
 0x20d   :  { %v286_v28 = vpop.f32.mrb[0].mxu1 }
 0x20e   :  { %v287_v29 = vadd.f32 %v318_v27, %v286_v28  ;;  %v383_v30 = vpop.f32.mrb[1].mxu1 }
 0x20f   :  { %v289_v31 = vpop.f32.mrb[2].mxu1 }
 0x210   :  { %292 = vst [vmem:[#allocation9] sm:$0xff] %v287_v29  ;;  %v384_v32 = vpop.f32.mrb[3].mxu1 }
 0x211   :  { %486 = shalt.err (!%p483_p0)
}
 0x212   :  { %s487_s4 = scalar_lea.hbm %s606_s5, 128 }
 0x213   :  { %p488_p1 = scmp.ne.s32.totalorder %s606_s5, %s487_s4  ;;  %p491_p2 = scmp.lt.u32.totalorder %s487_s4, %s606_s5 }
 0x215   :  { %p493_p3 = pnand %p491_p2, %p488_p1 }
 0x217   :  { %496 = shalt.err (!%p493_p3)
}
 0x218   :  { %302 = dma.vmem_to_hbm [thread:$0]  %s300_s8, 128, %s606_s5, [#allocation5]  }
 0x219   :  { %501 = dma.done.wait [#allocation5], 128  }
 0x21a   :  { %502 = vsyncadd [#allocation5], 4294967168 }
 0x21b   :  { %306 = vsyncpa [#allocation4], 1 }
 0x21c   :  { %307 = vsyncpa [#allocation7], 1 }
 0x21d   :  { %308 = vsyncpa [#allocation5], 1 }

</bundles_post_ra>
